<compile_context>
chip_gen: v7x
topology: tpu7x:2x2x1
jax: 0.10.0
libtpu: 0.0.40
codegen_flags: <defaults>
</compile_context>

<pallas_src>
import functools

import jax
import jax.numpy as jnp
from jax.experimental import pallas as pl
from jax.experimental.pallas import tpu as pltpu


def _round_up(x, m):
    return ((x + m - 1) // m) * m


def _round_down(x, m):
    return max(m, (x // m) * m)


def _tpu_generation():
    """Best-effort chip-generation probe -> (gen_str, vmem_capacity_bytes)."""
    kind = ""
    try:
        kind = jax.devices()[0].device_kind.lower()
    except Exception:
        pass
    vmem_bytes = None
    try:
        vmem_bytes = int(pltpu.get_tpu_info().vmem_capacity_bytes)
    except Exception:
        vmem_bytes = None
    if "v7" in kind or "tpu7" in kind or (
            vmem_bytes is not None and vmem_bytes <= (80 << 20)):
        gen = "v7x"
    elif "v6" in kind:
        gen = "v6e"
    elif "v5" in kind:
        gen = "v5e"
    else:
        gen = "unknown"
    if vmem_bytes is None:
        vmem_bytes = (64 << 20) if gen == "v7x" else (128 << 20)
    return gen, vmem_bytes


def _generator_kernel(x_ref, w_ref, b_ref, o_ref, m_ref, l_ref,
                      *, v_total, tv, mask_cols):
    # x_ref: (tm, H) bf16   w_ref: (H, tv) bf16   b_ref: (1, tv) f32
    # o_ref: (tm, tv)       m_ref/l_ref: (tm, 1) f32 scratch (persist over grid)
    p = pl.program_id(1)    # 0: online-stats pass, 1: write pass
    j = pl.program_id(2)    # vocab tile index
    nj = pl.num_programs(2)

    # Logits tile on the MXU: bf16 operands, f32 accumulation; bias in f32.
    logits = jnp.dot(x_ref[...], w_ref[...], preferred_element_type=jnp.float32)
    logits = logits + b_ref[...]

    @pl.when(jnp.logical_and(p == 0, j == 0))
    def _init():
        m_ref[...] = jnp.full(m_ref.shape, -jnp.inf, dtype=jnp.float32)
        l_ref[...] = jnp.zeros(l_ref.shape, dtype=jnp.float32)

    def _update(lg):
        m_prev = m_ref[...]
        m_new = jnp.maximum(m_prev, jnp.max(lg, axis=-1, keepdims=True))
        l_ref[...] = (l_ref[...] * jnp.exp(m_prev - m_new)
                      + jnp.sum(jnp.exp(lg - m_new), axis=-1, keepdims=True))
        m_ref[...] = m_new

    if mask_cols:
        # Ragged final vocab tile: pay the iota/compare/select only there.
        @pl.when(jnp.logical_and(p == 0, j < nj - 1))
        def _stats_dense():
            _update(logits)

        @pl.when(jnp.logical_and(p == 0, j == nj - 1))
        def _stats_ragged():
            col = j * tv + jax.lax.broadcasted_iota(jnp.int32, logits.shape, 1)
            _update(jnp.where(col < v_total, logits, -jnp.inf))
    else:
        @pl.when(p == 0)
        def _stats():
            _update(logits)

    @pl.when(p == 1)
    def _write():
        lse = m_ref[...] + jnp.log(l_ref[...])
        o_ref[...] = (logits - lse).astype(o_ref.dtype)


def generator_forward(x, w, b, *, tm=None, tv=None, out_dtype=jnp.float32):
    """x: (B, T, H); w: (H, V) (f32 or pre-cast bf16); b: (V,) -> (B, T, V) log-probs."""
    B, T, H = x.shape
    V = w.shape[1]
    M = B * T

    # bf16 MXU operands.  Pass the weight already in bf16 to avoid a full
    # extra HBM pass over the largest tensor on every call.
    x2 = x.reshape(M, H).astype(jnp.bfloat16)
    w2 = w if w.dtype == jnp.bfloat16 else w.astype(jnp.bfloat16)
    b2 = b.reshape(1, V).astype(jnp.float32)

    gen, vmem_cap = _tpu_generation()
    is_v7x = gen == "v7x"

    # Generation-aware targets:
    #   v6e: big row tiles -> past its ~650 FLOP/byte crossover (less weight
    #        re-streaming); budget most of its 128 MiB VMEM.
    #   v5e: already compute-bound at tm~256; spend VMEM on larger vocab tiles
    #        to cut per-step overhead.
    #   v7x: 64 MiB physical VMEM per TC; leave compiler headroom.
    if is_v7x:
        tm_auto, tv_auto = 512, 1024
        budget, vmem_cap_limit, tv_mult = (48 << 20), (52 << 20), 256
    elif gen == "v6e":
        tm_auto, tv_auto = 640, 2048
        budget, vmem_cap_limit, tv_mult = (100 << 20), (112 << 20), 256
    else:  # v5e / unknown: conservative, v5e-like
        tm_auto, tv_auto = 256, 2048
        budget, vmem_cap_limit, tv_mult = (96 << 20), (112 << 20), 128
    budget = min(budget, int(vmem_cap * 0.80))
    vmem_cap_limit = min(vmem_cap_limit, int(vmem_cap * 0.85))

    # ---- row tile -----------------------------------------------------------
    user_tm = tm is not None
    tm = tm_auto if tm is None else tm
    tm = min(tm, _round_up(M, 16))
    if tm >= 256 and not user_tm:
        tm = (tm // 256) * 256            # MXU-friendly (2x256^2 on v6e/v7x)
    else:
        tm = max(16, (tm // 16) * 16)     # bf16 packs (16,128) per vreg
    # Megacore split only on v7x (2 TCs); prefer exactly two large row tiles,
    # never halve an already-small tile (v5e/v6e: split only re-streams weights).
    if is_v7x and M > 256 and pl.cdiv(M, tm) < 2:
        tm = max(256, _round_up(pl.cdiv(M, 2), 256))

    # ---- vocab tile ---------------------------------------------------------
    user_tv = tv is not None
    tv = tv_auto if tv is None else tv
    tv = min(tv, V)
    if tv < V:
        mult = 128 if user_tv else tv_mult
        tv = max(mult, (tv // mult) * mult)

    # ---- VMEM budget / shrink loop ------------------------------------------
    out_bytes = jnp.dtype(out_dtype).itemsize

    def vmem_estimate(tm_, tv_):
        return (2 * H * tv_ * 2            # weight tile (bf16), double-buffered
                + 2 * tv_ * 4              # bias tile (f32), double-buffered
                + 2 * tm_ * H * 2          # x row tile (bf16), double-buffered
                + 2 * tm_ * tv_ * out_bytes  # output tile, double-buffered
                + 2 * tm_ * 4)             # m / l scratch (f32)

    while vmem_estimate(tm, tv) > budget and tv > tv_mult:
        tv = _round_down(tv // 2, tv_mult)
    while vmem_estimate(tm, tv) > budget and tm > 256:
        tm = _round_down(tm // 2, 256)

    grid = (pl.cdiv(M, tm), 2, pl.cdiv(V, tv))
    n_row = grid[0]
    mask_cols = (V % tv) != 0

    kernel = functools.partial(_generator_kernel,
                               v_total=V, tv=tv, mask_cols=mask_cols)

    cost = pl.CostEstimate(
        flops=2 * 2 * M * H * V,            # matmul executed in both passes
        transcendentals=M * V,              # exp in the stats pass
        bytes_accessed=(n_row * 2 * (H * V * 2 + V * 4)  # weight+bias streamed per (row tile, pass)
                        + M * H * 2                       # x read once per row tile
                        + M * V * out_bytes),             # log-prob write
    )

    vmem_limit = int(min(vmem_cap_limit,
                         max(32 << 20, vmem_estimate(tm, tv) + (8 << 20))))

    out = pl.pallas_call(
        kernel,
        out_shape=jax.ShapeDtypeStruct((M, V), out_dtype),
        grid_spec=pltpu.PrefetchScalarGridSpec(
            num_scalar_prefetch=0,
            grid=grid,
            in_specs=[
                # x row tile: constant across (pass, vocab) -> fetched once per row tile
                pl.BlockSpec((tm, H), lambda i, p, j: (i, 0)),
                # weight / bias vocab tiles, streamed in both passes
                pl.BlockSpec((H, tv), lambda i, p, j: (0, j)),
                pl.BlockSpec((1, tv), lambda i, p, j: (0, j)),
            ],
            # Pass 0 parks the output on vocab block 0 (never written: _write is
            # gated on p == 1).  With the (i, p, j) iteration order (j fastest),
            # the parked (i, 0) block is fully overwritten by the first p == 1
            # step before the block index changes, so each (i, j) tile is
            # written back to HBM exactly once.  This relies on that iteration
            # order; do not reorder the grid axes.
            out_specs=pl.BlockSpec((tm, tv), lambda i, p, j: (i, p * j)),
            scratch_shapes=[
                pltpu.VMEM((tm, 1), jnp.float32),   # running max per row
                pltpu.VMEM((tm, 1), jnp.float32),   # running sum(exp) per row
            ],
        ),
        compiler_params=pltpu.CompilerParams(
            dimension_semantics=("parallel", "arbitrary", "arbitrary"),
            vmem_limit_bytes=vmem_limit,
        ),
        cost_estimate=cost,
    )(x2, w2, b2)
    return out.reshape(B, T, V)


def reference_forward(x, w, b, *, matmul_dtype=jnp.float32):
    logits = jnp.einsum(
        "bth,hv->btv",
        x.astype(matmul_dtype), w.astype(matmul_dtype),
        preferred_element_type=jnp.float32,
    ) + b.astype(jnp.float32)
    return jax.nn.log_softmax(logits, axis=-1)


if __name__ == "__main__":
    # Small shapes consistent with the module: batch=2, tgt_len=8, hid=32.
    B, T, H = 2, 8, 32
    key = jax.random.PRNGKey(0)

    # Two vocab sizes with tv=128: clean tiling (384) and ragged last tile (320).
    for V in (384, 320):
        kx, kw, kb = jax.random.split(jax.random.fold_in(key, V), 3)
        x = jax.random.normal(kx, (B, T, H), dtype=jnp.float32)
        # nn.Linear-style init: uniform(-1/sqrt(H), 1/sqrt(H)); weight stored
        # transposed (H, V) for the row-major matmul.
        bound = 1.0 / jnp.sqrt(jnp.float32(H))
        w = jax.random.uniform(kw, (H, V), dtype=jnp.float32,
                               minval=-bound, maxval=bound)
        b = jax.random.uniform(kb, (V,), dtype=jnp.float32,
                               minval=-bound, maxval=bound)

        # Cast the weight to bf16 once (stored-parameter style) so the kernel
        # call itself does not re-stream a fresh bf16 copy every invocation.
        w_bf16 = w.astype(jnp.bfloat16)

        out = jax.block_until_ready(generator_forward(x, w_bf16, b, tv=128))
        assert out.shape == (B, T, V)

        # Tight check against a reference using the same bf16 matmul operands.
        ref_match = reference_forward(x, w, b, matmul_dtype=jnp.bfloat16)
        err_match = float(jnp.max(jnp.abs(out - ref_match)))
        assert jnp.allclose(out, ref_match, atol=5e-4, rtol=5e-4), err_match

        # Loose check against the full-f32 module semantics.
        ref_f32 = reference_forward(x, w, b)
        err_f32 = float(jnp.max(jnp.abs(out - ref_f32)))
        assert jnp.allclose(out, ref_f32, atol=5e-2, rtol=5e-2), err_f32

        # Also exercise the generation-aware auto-tiling path (tm/tv = None).
        out_auto = jax.block_until_ready(generator_forward(x, w_bf16, b))
        err_auto = float(jnp.max(jnp.abs(out_auto - ref_match)))
        assert jnp.allclose(out_auto, ref_match, atol=5e-4, rtol=5e-4), err_auto

    print("KERNEL_OK")
</pallas_src>

<mosaic_0001>
module attributes {stable_mosaic.version = 11 : i64} {
  func.func @_generator_kernel(%arg0: i32, %arg1: i32, %arg2: i32, %arg3: memref<16x32xbf16, #tpu.memory_space<vmem>>, %arg4: memref<32x128xbf16, #tpu.memory_space<vmem>>, %arg5: memref<1x128xf32, #tpu.memory_space<vmem>>, %arg6: memref<16x128xf32, #tpu.memory_space<vmem>>, %arg7: memref<16x1xf32, #tpu.memory_space<vmem>>, %arg8: memref<16x1xf32, #tpu.memory_space<vmem>>) attributes {dimension_semantics = [#tpu.dimension_semantics<parallel>, #tpu.dimension_semantics<arbitrary>, #tpu.dimension_semantics<arbitrary>], iteration_bounds = array<i64: 1, 2, 3>, scalar_prefetch = 0 : i64, scratch_operands = 2 : i64, tpu.core_type = #tpu.core_type<tc>, window_params = [{transform_indices = @transform_0, window_bounds = array<i64: 16, 32>}, {transform_indices = @transform_1, window_bounds = array<i64: 32, 128>}, {transform_indices = @transform_2, window_bounds = array<i64: 1, 128>}, {transform_indices = @transform_3, window_bounds = array<i64: 16, 128>}]} {
    %c0 = arith.constant 0 : index
    %c0_0 = arith.constant 0 : index
    %0 = vector.load %arg3[%c0, %c0_0] : memref<16x32xbf16, #tpu.memory_space<vmem>>, vector<16x32xbf16>
    %c0_1 = arith.constant 0 : index
    %c0_2 = arith.constant 0 : index
    %1 = vector.load %arg4[%c0_1, %c0_2] : memref<32x128xbf16, #tpu.memory_space<vmem>>, vector<32x128xbf16>
    %cst = arith.constant dense<0.000000e+00> : vector<16x128xf32>
    %2 = tpu.matmul %0, %1, %cst {dimension_numbers = #tpu.dot_dimension_numbers<[1], [0], [0], [1], [0, 0, 1, 1], [], []>} : vector<16x32xbf16>, vector<32x128xbf16>, vector<16x128xf32> -> vector<16x128xf32>
    %c0_3 = arith.constant 0 : index
    %c0_4 = arith.constant 0 : index
    %3 = vector.load %arg5[%c0_3, %c0_4] : memref<1x128xf32, #tpu.memory_space<vmem>>, vector<1x128xf32>
    %4 = vector.broadcast %3 : vector<1x128xf32> to vector<16x128xf32>
    %5 = arith.addf %2, %4 : vector<16x128xf32>
    %c0_i32 = arith.constant 0 : i32
    %6 = arith.cmpi eq, %arg1, %c0_i32 : i32
    %c0_i32_5 = arith.constant 0 : i32
    %7 = arith.cmpi eq, %arg2, %c0_i32_5 : i32
    %8 = arith.andi %6, %7 : i1
    %9 = arith.extui %8 : i1 to i32
    %c0_i32_6 = arith.constant 0 : i32
    %10 = arith.cmpi ne, %9, %c0_i32_6 : i32
    scf.if %10 {
      %cst_10 = arith.constant 0xFF800000 : f32
      %17 = vector.broadcast %cst_10 : f32 to vector<16x1xf32>
      %c0_11 = arith.constant 0 : index
      %c0_12 = arith.constant 0 : index
      %18 = vector.load %arg7[%c0_11, %c0_12] : memref<16x1xf32, #tpu.memory_space<vmem>>, vector<16x1xf32>
      tpu.vector_store %arg7[%c0_11, %c0_12], %17 {strides = array<i32>} : memref<16x1xf32, #tpu.memory_space<vmem>>, vector<16x1xf32>,
      %cst_13 = arith.constant 0.000000e+00 : f32
      %19 = vector.broadcast %cst_13 : f32 to vector<16x1xf32>
      %c0_14 = arith.constant 0 : index
      %c0_15 = arith.constant 0 : index
      %20 = vector.load %arg8[%c0_14, %c0_15] : memref<16x1xf32, #tpu.memory_space<vmem>>, vector<16x1xf32>
      tpu.vector_store %arg8[%c0_14, %c0_15], %19 {strides = array<i32>} : memref<16x1xf32, #tpu.memory_space<vmem>>, vector<16x1xf32>,
    } else {
    }
    %c0_i32_7 = arith.constant 0 : i32
    %11 = arith.cmpi eq, %arg1, %c0_i32_7 : i32
    %12 = arith.extui %11 : i1 to i32
    %c0_i32_8 = arith.constant 0 : i32
    %13 = arith.cmpi ne, %12, %c0_i32_8 : i32
    scf.if %13 {
      %c0_10 = arith.constant 0 : index
      %c0_11 = arith.constant 0 : index
      %17 = vector.load %arg7[%c0_10, %c0_11] : memref<16x1xf32, #tpu.memory_space<vmem>>, vector<16x1xf32>
      %cst_12 = arith.constant dense<0xFF800000> : vector<16xf32>
      %18 = vector.multi_reduction <maximumf>, %5, %cst_12 [1] : vector<16x128xf32> to vector<16xf32>
      %19 = vector.shape_cast %18 : vector<16xf32> to vector<16x1xf32>
      %20 = arith.maximumf %17, %19 : vector<16x1xf32>
      %c0_13 = arith.constant 0 : index
      %c0_14 = arith.constant 0 : index
      %21 = vector.load %arg8[%c0_13, %c0_14] : memref<16x1xf32, #tpu.memory_space<vmem>>, vector<16x1xf32>
      %22 = arith.subf %17, %20 : vector<16x1xf32>
      %23 = math.exp %22 : vector<16x1xf32>
      %24 = arith.mulf %21, %23 : vector<16x1xf32>
      %25 = vector.broadcast %20 : vector<16x1xf32> to vector<16x128xf32>
      %26 = arith.subf %5, %25 : vector<16x128xf32>
      %27 = math.exp %26 : vector<16x128xf32>
      %cst_15 = arith.constant dense<0.000000e+00> : vector<16xf32>
      %28 = vector.multi_reduction <add>, %27, %cst_15 [1] : vector<16x128xf32> to vector<16xf32>
      %29 = vector.shape_cast %28 : vector<16xf32> to vector<16x1xf32>
      %30 = arith.addf %24, %29 : vector<16x1xf32>
      %c0_16 = arith.constant 0 : index
      %c0_17 = arith.constant 0 : index
      %31 = vector.load %arg8[%c0_16, %c0_17] : memref<16x1xf32, #tpu.memory_space<vmem>>, vector<16x1xf32>
      tpu.vector_store %arg8[%c0_16, %c0_17], %30 {strides = array<i32>} : memref<16x1xf32, #tpu.memory_space<vmem>>, vector<16x1xf32>,
      %c0_18 = arith.constant 0 : index
      %c0_19 = arith.constant 0 : index
      %32 = vector.load %arg7[%c0_18, %c0_19] : memref<16x1xf32, #tpu.memory_space<vmem>>, vector<16x1xf32>
      tpu.vector_store %arg7[%c0_18, %c0_19], %20 {strides = array<i32>} : memref<16x1xf32, #tpu.memory_space<vmem>>, vector<16x1xf32>,
    } else {
    }
    %c1_i32 = arith.constant 1 : i32
    %14 = arith.cmpi eq, %arg1, %c1_i32 : i32
    %15 = arith.extui %14 : i1 to i32
    %c0_i32_9 = arith.constant 0 : i32
    %16 = arith.cmpi ne, %15, %c0_i32_9 : i32
    scf.if %16 {
      %c0_10 = arith.constant 0 : index
      %c0_11 = arith.constant 0 : index
      %17 = vector.load %arg7[%c0_10, %c0_11] : memref<16x1xf32, #tpu.memory_space<vmem>>, vector<16x1xf32>
      %c0_12 = arith.constant 0 : index
      %c0_13 = arith.constant 0 : index
      %18 = vector.load %arg8[%c0_12, %c0_13] : memref<16x1xf32, #tpu.memory_space<vmem>>, vector<16x1xf32>
      %19 = math.log %18 : vector<16x1xf32>
      %20 = arith.addf %17, %19 : vector<16x1xf32>
      %21 = vector.broadcast %20 : vector<16x1xf32> to vector<16x128xf32>
      %22 = arith.subf %5, %21 : vector<16x128xf32>
      %c0_14 = arith.constant 0 : index
      %c0_15 = arith.constant 0 : index
      %23 = vector.load %arg6[%c0_14, %c0_15] : memref<16x128xf32, #tpu.memory_space<vmem>>, vector<16x128xf32>
      tpu.vector_store %arg6[%c0_14, %c0_15], %22 {strides = array<i32>} : memref<16x128xf32, #tpu.memory_space<vmem>>, vector<16x128xf32>,
    } else {
    }
    return
  }
  func.func @transform_0(%arg0: i32, %arg1: i32, %arg2: i32) -> (i32, i32) {
    %c0_i32 = arith.constant 0 : i32
    %c0_i32_0 = arith.constant 0 : i32
    return %arg0, %c0_i32 : i32, i32
  }
  func.func @transform_1(%arg0: i32, %arg1: i32, %arg2: i32) -> (i32, i32) {
    %c0_i32 = arith.constant 0 : i32
    %c0_i32_0 = arith.constant 0 : i32
    return %c0_i32, %arg2 : i32, i32
  }
  func.func @transform_2(%arg0: i32, %arg1: i32, %arg2: i32) -> (i32, i32) {
    %c0_i32 = arith.constant 0 : i32
    %c0_i32_0 = arith.constant 0 : i32
    return %c0_i32, %arg2 : i32, i32
  }
  func.func @transform_3(%arg0: i32, %arg1: i32, %arg2: i32) -> (i32, i32) {
    %0 = arith.muli %arg1, %arg2 : i32
    %c0_i32 = arith.constant 0 : i32
    return %arg0, %0 : i32, i32
  }
}

</mosaic_0001>

<bundles_post_ra>
// kernel: tpu_custom_call.1
= control target key start
LH: loop header
LB: loop body
LE: loop exit
PB: predicated region body
PF: predicated region fallthrough
CT: control target
= control target key end

     0   :  { %s1248_s0 = inlined_call_operand.hbm [shape: bf16[16,32], index: 0, kind: input, shape index: {}]   ;;  %s1249_s1 = inlined_call_operand.hbm [shape: bf16[32,384], index: 1, kind: input, shape index: {}]   ;;  %s1250_s2 = inlined_call_operand.vmem [shape: f32[1,384], index: 2, kind: input, shape index: {}]   ;;  %s1251_s3 = inlined_call_operand.hbm [shape: f32[16,384], index: 3, kind: output, shape index: {}]  }
   0x1   :  { %1263 = sst [smem:[#allocation16_spill]] %s1248_s0 }
   0x2   :  { %8 = vsyncpa [#allocation5], 0 }
   0x3   :  { %9 = vsyncpa [#allocation8], 0 }
   0x4   :  { %11 = vsyncpa [#allocation8 + $0x1], 0 }
   0x5   :  { %12 = vsyncpa [#allocation6], 0 }
   0x6   :  { %14 = vsyncpa [#allocation6 + $0x1], 0  ;;  %s940_s12 = smov 0   ;;  %s942_s13 = smov 0  }
   0x7   :  { %s944_s14 = smov 0   ;;  %s946_s15 = smov 0  }
   0x8   :  { %s948_s16 = smov 0   ;;  %s950_s17 = smov 0  }
   0x9   :  { %s952_s18 = smov 0   ;;  %s954_s19 = smov 0  }
   0xa   :  { %s956_s20 = smov 0   ;;  %s958_s21 = smov 0  }
   0xb   :  { %s960_s22 = smov 0  }
   0xc LB: > { %1264 = sst [smem:[#allocation13_spill]] %s895_s20  ;;  %s543_s23 = sadd.s32 4294967295, %s903_s22   ;;  %s903_s22 = sphi %s960_s22, %s20_s22   ;;  %s899_s21 = sphi %s958_s21, %s1296_s21   ;;  %s895_s20 = sphi %s956_s20, %s1295_s20   ;;  %s891_s19 = sphi %s954_s19, %s1288_s19   ;;  %s887_s18 = sphi %s952_s18, %s1287_s18   ;;  %s883_s17 = sphi %s950_s17, %s1294_s17   ;;  %s879_s16 = sphi %s948_s16, %s1293_s16   ;;  %s875_s15 = sphi %s946_s15, %s1292_s15   ;;  %s871_s14 = sphi %s944_s14, %s1291_s14   ;;  %s867_s13 = sphi %s942_s13, %s1290_s13   ;;  %s863_s12 = sphi %s940_s12, %s1289_s12  }
   0xd   : > { %1265 = sst [smem:[#allocation14_spill]] %s899_s21  ;;  %s544_s24 = sadd.s32 4294967294, %s903_s22  }
   0xe   : > { %p79_p0 = scmp.ne.s32.totalorder %s883_s17, %s879_s16  ;;  %p80_p1 = scmp.eq.s32.totalorder %s903_s22, 0 }
   0xf   : > { %p85_p2 = scmp.ne.s32.totalorder %s879_s16, %s875_s15  ;;  %p1000_p3 = scmp.eq.s32.totalorder %s543_s23, 0 }
  0x10   : > { %p1005_p4 = por %p80_p1, %p79_p0  ;;  %p138_p5 = scmp.ne.s32.totalorder %s871_s14, %s867_s13 }
  0x11   : > { %s1266_s26 = scalar_select %p1000_p3, 1, 0 }
  0x12   : > { %p1013_p6 = por %p1000_p3, %p85_p2  ;;  %p139_p7 = scmp.eq.s32.totalorder %s543_s23, 5 }
  0x13   : > { %p144_p8 = scmp.ne.s32.totalorder %s867_s13, %s863_s12  ;;  %p145_p9 = scmp.eq.s32.totalorder %s544_s24, 5 }
  0x14   : > { %s1268_s29 = scalar_select %p1013_p6, 1, 0 }
  0x15   : > { %p1019_p10 = por %p139_p7, %p138_p5  ;;  %p545_p11 = scmp.ge.s32.totalorder %s903_s22, 1 }
  0x16   : > { %p1024_p12 = por %p145_p9, %p144_p8  ;;  %p152_p13 = scmp.lt.s32.totalorder %s903_s22, 7 }
  0x17   : > { %s1269_s30 = scalar_select %p1019_p10, 1, 0 }
  0x18   : > { %s1270_s4 = scalar_select %p1024_p12, 1, 0 }
  0x19   : > { %p1029_p0 = pnand %p545_p11, %p152_p13  ;;  %s905_s6 = smov [#allocation4]  }
  0x1a   : > { %1271 = sst [smem:[#allocation15_spill]] %s1270_s4  ;;  %s167_s7 = sshll.u32 %s905_s6, 4  ;;  %s168_s7 = int_to_ptr.vmem [resolvable:$true] %s167_s7 }
  0x1b   : > { %s1272_s5 = scalar_select %p1029_p0, 1, 0 }
  0x1c   : > { %p584_p1 = pneg %p1029_p0  ;;  %p597_p2 = scmp.lt.s32.totalorder %s903_s22, 6 }
  0x1d   : > { %s1275_s0 = sld [smem:[#allocation16_spill]] }
  0x1e   : > { %p1038_p5 = pnand %p584_p1, %p1000_p3  ;;  %p1044_p7 = pnand %p597_p2, %p1005_p4 }
  0x20   : > { %s1274_s9 = scalar_select %p1044_p7, 1, 0 }
  0x21   : > { %p721_p9 = pneg %p1038_p5 }
  0x23   : > { %s719_s15 = scalar_lea.hbm %s1275_s0, 128 }
  0x24   : > { %p720_p8 = scmp.ne.s32.totalorder %s1275_s0, %s719_s15  ;;  %p726_p1 = scmp.lt.u32.totalorder %s719_s15, %s1275_s0 }
  0x26   : > { %p722_p11 = pnand %p721_p9, %p720_p8 }
  0x28   : > { %p723_p13 = pneg %p722_p11 }
  0x2a   : > { %p728_p4 = pnand %p726_p1, %p723_p13 }
  0x2c   : > { %731 = shalt.err (!%p728_p4)
}
  0x2d   : > { %s732_s28 = scalar_lea.vmem %s168_s7, 128  ;;  %p740_p6 = scmp.lt.s32.totalorder %s168_s7, %s168_s7 }
  0x2e   : > { %p733_p2 = scmp.ne.s32.totalorder %s168_s7, %s732_s28  ;;  %p741_p3 = scmp.lt.s32.totalorder %s732_s28, %s732_s28 }
  0x30   : > { %p735_p12 = pnand %p733_p2, %p721_p9  ;;  %p742_p0 = por %p741_p3, %p740_p6 }
  0x32   : > { %p736_p10 = pneg %p735_p12 }
  0x34   : > { %p743_p7 = pnand %p742_p0, %p736_p10 }
  0x36   : > { %746 = shalt.err (!%p743_p7)
}
  0x37   : > { %s1259_s10 = smov 64   ;;  %s1260_s27 = smov 4  }
  0x38   : > { %587 = dma.hbm_to_vmem [thread:$0]  (!%p1038_p5), %s1275_s0, 128, %s168_s7, [#allocation5], %s1259_s10, %s1259_s10, %s1260_s27  }
  0x39   : > { %s32_s23 = sadd.s32 1, %s895_s20  ;;  %s35_s24 = sadd.s32 1, %s899_s21 }
  0x3a   : > { %p33_p3 = scmp.ge.s32.totalorder %s32_s23, 3  ;;  %s121_s6 = smul.u32 %s895_s20, %s899_s21 }
  0x3b   : > { %s181_s28 = sand.u32 1, %s883_s17   ;;  %s549_s25 = sshll.u32 %s895_s20, 6 }
  0x3c   : > { %s1298_s23 = smov (%p33_p3, %s32_s23), 0  ;;  %s1300_s24 = smov (!%p33_p3, %s35_s24), %s899_s21 }
  0x3d   : > { %s69_s8 = ssub.s32 %s895_s20, %s1298_s23  ;;  %p37_p6 = scmp.ge.s32.totalorder %s1300_s24, 2 }
  0x3e   : > { %p70_p10 = scmp.eq.s32.totalorder %s69_s8, 0  ;;  %s548_s11 = sshll.u32 %s181_s28, 4 }
  0x3f   : > { %s1081_s7 = scalar_lea.hbm %s1249_s1, %s549_s25  ;;  %s1302_s24 = smov (%p37_p6, %s1300_s24), 0 }
  0x40   : > { %s1276_s10 = sadd.s32 1, %s883_s17  ;;  %s122_s0 = smul.u32 %s1302_s24, %s1298_s23 }
  0x41   : > { %s1088_s27 = scalar_select %p70_p10, %s883_s17, %s1276_s10  }
  0x42   : > { %s185_s21 = scalar_lea.vmem [#allocation7], %s548_s11  ;;  %s1092_s8 = ssub.s32 %s121_s6, %s122_s0 }
  0x43   : > { %s191_s20 = sshll.u32 %s185_s21, 4  ;;  %p126_p12 = scmp.eq.s32.totalorder %s1092_s8, 0  ;;  %s1094_s20 = int_to_ptr.vmem [resolvable:$true] %s191_s20 }
  0x44   : > { %s1097_s25 = scalar_lea.sflag [#allocation8], %s181_s28  ;;  %s747_s4 = scalar_lea.hbm %s1081_s7, 256 }
  0x45   : > { %p748_p0 = scmp.ne.s32.totalorder %s1081_s7, %s747_s4  ;;  %p1277_p5 = scmp.ne.s32.totalorder %s1274_s9, 0 }
  0x46   : > { %s752_s21 = scalar_lea.hbm %s1249_s1, 768  ;;  %p753_p11 = scmp.lt.u32.totalorder %s1081_s7, %s1249_s1 }
  0x47   : > { %p749_p7 = pneg %p1277_p5  ;;  %p754_p13 = scmp.lt.u32.totalorder %s752_s21, %s747_s4 }
  0x48   : > { %p756_p4 = scmp.lt.u32.totalorder %s747_s4, %s1081_s7 }
  0x49   : > { %p750_p8 = pnand %p749_p7, %p748_p0  ;;  %p755_p1 = por %p754_p13, %p753_p11 }
  0x4b   : > { %p751_p9 = pneg %p750_p8  ;;  %p757_p2 = por %p756_p4, %p755_p1 }
  0x4d   : > { %p758_p3 = pnand %p757_p2, %p751_p9 }
  0x4f   : > { %761 = shalt.err (!%p758_p3)
}
  0x50   : > { %s762_s28 = scalar_lea.vmem %s1094_s20, 256  ;;  %s908_s11 = smov [#allocation7]  }
  0x51   : > { %p763_p6 = scmp.ne.s32.totalorder %s1094_s20, %s762_s28  ;;  %s767_s10 = sshll.u32 %s908_s11, 4  ;;  %s768_s10 = int_to_ptr.vmem [resolvable:$false] %s767_s10 }
  0x52   : > { %s769_s15 = scalar_lea.vmem %s768_s10, 512  ;;  %p770_p8 = scmp.lt.s32.totalorder %s1094_s20, %s768_s10 }
  0x53   : > { %p765_p10 = pnand %p763_p6, %p749_p7  ;;  %p771_p11 = scmp.lt.s32.totalorder %s769_s15, %s762_s28 }
  0x55   : > { %p766_p0 = pneg %p765_p10  ;;  %p772_p13 = por %p771_p11, %p770_p8 }
  0x57   : > { %p773_p1 = pnand %p772_p13, %p766_p0 }
  0x59   : > { %776 = shalt.err (!%p773_p1)
}
  0x5a   : > { %s909_s4 = smov 192   ;;  %s1278_s21 = smov 4  }
  0x5b   : > { %s1279_s0 = smov 64   ;;  %s1280_s6 = sadd.s32 1, %s871_s14 }
  0x5c   : > { %591 = dma.hbm_to_vmem [thread:$0]  (!%p1277_p5), %s1081_s7, 256, %s1094_s20, %s1097_s25, %s909_s4, %s1279_s0, %s1278_s21  }
  0x5d   : > { %s1132_s11 = scalar_select %p126_p12, %s871_s14, %s1280_s6  }
  0x5e   : > { %p1281_p7 = scmp.ne.s32.totalorder %s1272_s5, 0 }
  0x5f   : > { %p1282_p9 = scmp.ne.s32.totalorder (!%p1281_p7), %s1266_s26, 0 }
  0x60   : > { %209 = sbr.rel (%p1281_p7) target bundleno = 950 (0x3b6), region = 32 }
  0x67   : > { %850 = dma.done.wait (%p1282_p9), [#allocation5], 128  }
  0x68   : > { %852 = vsyncadd (%p1282_p9), [#allocation5], 4294967168  ;;  %s215_s9 = sand.u32 1, %s879_s16   ;;  %p1283_p5 = scmp.ne.s32.totalorder %s1268_s29, 0 }
  0x69   : > { %s552_s28 = sshll.u32 %s215_s9, 4  ;;  %s216_s10 = scalar_lea.sflag [#allocation8], %s215_s9 }
  0x6a   : > { %s219_s15 = scalar_lea.vmem [#allocation7], %s552_s28 }
  0x6b   : > { %854 = dma.done.wait (%p1283_p5), %s216_s10, 256  }
  0x6c   : > { %856 = vsyncadd (%p1283_p5), %s216_s10, 4294967040  ;;  %s242_s20 = sand.u32 1, %s867_s13   ;;  %v910_v0 = vmov 0.0   ;;  %vm911_vm0 = vmmov 0   ;;  %v701_v1 = vld [vmem:[%s219_s15] sm:$0xff]   ;;  %v702_v2 = vld [vmem:[%s219_s15 + $0x8] sm:$0xff]  }
  0x6d   : > { %s553_s5 = sshll.u32 %s242_s20, 4  ;;  %568 = vmatprep.subr.bf16.mxu0 %v910_v0  ;;  %572 = vmatprep.mubr.msk.bf16.mxu0 %vm911_vm0, %v910_v0  ;;  %v703_v3 = vld [vmem:[#allocation4] sm:$0xff]   ;;  %vm282_vm1 = vcmask 261120   ;;  %p327_p12 = scmp.eq.s32.totalorder %s891_s19, 0 }
  0x6e   : > { %569 = vmatpush3.bf16.msra.mxu0 %v701_v1  ;;  %p328_p4 = scmp.eq.s32.totalorder %s887_s18, 0  ;;  %p246_p3 = scmp.lt.s32.totalorder %s887_s18, 2 }
  0x6f   : > { %570 = vmatprep.subr.bf16.mxu0 %v910_v0  ;;  %s1159_s25 = scalar_lea.vmem [#allocation9], %s553_s5 }
  0x70   : > { %p329_p2 = pnand %p328_p4, %p327_p12 }
  0x71   : > { %s247_s26 = scalar_select %p246_p3, %s887_s18, 2 }
  0x72   : > { %571 = vmatpush3.bf16.msra.mxu0 %v702_v2  ;;  %vm333_vm2 = vcmask (!%p329_p2), 7168   ;;  %v912_v11 = vmov (!%p329_p2), -inf   ;;  %v913_v12 = vmov (!%p329_p2), 0.0  }
  0x73   : > { %s248_s8 = scalar_lea.vmem %s1250_s2, %s247_s26  ;;  %334 = vst.msk [vmem:[#allocation2] sm:$0xff] (!%p329_p2), %vm333_vm2, %v912_v11  ;;  %335 = vst.msk [vmem:[#allocation2 + $0x8] sm:$0xff] (!%p329_p2), %vm333_vm2, %v912_v11 }
  0x74   : > { %v554_v4 = vld [vmem:[%s248_s8] ss:$0 sm:$0xff]  ;;  %336 = vst.msk [vmem:[#allocation3] sm:$0xff] (!%p329_p2), %vm333_vm2, %v913_v12  ;;  %337 = vst.msk [vmem:[#allocation3 + $0x8] sm:$0xff] (!%p329_p2), %vm333_vm2, %v913_v12 }
  0x75   : > { %573 = vmatmul.mubr.msk.bf16.vlgmr.msra.gmra.mrb[0].mxu0 %vm282_vm1, %v703_v3 }
 0x145   : > { %332 = sbr.rel (%p329_p2) target bundleno = 332 (0x14c), region = 44 }
 0x148   : > { %v320_v5 = vpop.f32.mrb[0].mxu0 }
 0x149   : > { %v1155_v6 = vadd.f32 %v554_v4, %v320_v5  ;;  %v574_v7 = vpop.f32.mrb[1].mxu0 }
 0x14a   : > { %v323_v8 = vpop.f32.mrb[2].mxu0 }
 0x14b   : > { %v1157_v9 = vadd.f32 %v554_v4, %v323_v8  ;;  %v575_v10 = vpop.f32.mrb[3].mxu0 }
 0x14c PF: > { %p559_p6 = scmp.ne.s32.totalorder %s891_s19, 0 }
 0x14d   : > { %343 = vmax.xlane.f32.xlu0 (!%p559_p6), %v1155_v6  ;;  %v914_v13 = vmov (!%p559_p6), 0   ;;  %v341_v14 = vld [vmem:[#allocation2] sm:$0xff] (!%p559_p6)  ;;  %vm381_vm3 = vcmask (!%p559_p6), 7168   ;;  %v342_v17 = vld [vmem:[#allocation2 + $0x8] sm:$0xff] (!%p559_p6)  ;;  %v349_v33 = vld [vmem:[#allocation3] sm:$0xff] (!%p559_p6) }
 0x14e   : > { %340 = sbr.rel (%p559_p6) target bundleno = 769 (0x301), region = 48  ;;  %704 = vset.pattern.permute.xlu1 (!%p559_p6), %v914_v13  ;;  %705 = vset.pattern.permute.xlu0 (!%p559_p6), %v914_v13  ;;  %v350_v37 = vld [vmem:[#allocation3 + $0x8] sm:$0xff] (!%p559_p6) }
 0x151   : > { %345 = vmax.xlane.f32.xlu0 (!%p559_p6), %v1157_v9 }
 0x1da   : > { %v344_v15 = vpop.xlane.xlu0 %343 }
 0x1db   : > { %v347_v16 = vmax.f32 %v341_v14, %v344_v15 }
 0x1dd   : > { %v351_v18 = vsub.f32 %v341_v14, %v347_v16  ;;  %384 = vst.msk [vmem:[#allocation2] sm:$0xff] %vm381_vm3, %v347_v16  ;;  %361 = vperm.xlu1 %704, %v347_v16  }
 0x1de   : > { %v346_v19 = vpop.xlane.xlu0 %345 }
 0x1df   : > { %v348_v20 = vmax.f32 %v342_v17, %v346_v19  ;;  %v353_v30 = vmul.f32 1.442695, %v351_v18 }
 0x1e1   : > { %v352_v21 = vsub.f32 %v342_v17, %v348_v20  ;;  %385 = vst.msk [vmem:[#allocation2 + $0x8] sm:$0xff] %vm381_vm3, %v348_v20  ;;  %366 = vperm.xlu1 %704, %v348_v20  }
 0x1e3   : > { %v355_v31 = vmul.f32 1.442695, %v352_v21 }
 0x25c   : > { %v362_v22 = vpop.permute.xlu1 %361 }
 0x25d   : > { %v369_v23 = vsub.f32 %v1155_v6, %v362_v22 }
 0x25f   : > { %v371_v24 = vmul.f32 1.442695, %v369_v23 }
 0x260   : > { %v367_v25 = vpop.permute.xlu1 %366 }
 0x261   : > { %706 = vpow2.f32 %v371_v24  ;;  %v370_v26 = vsub.f32 %v1157_v9, %v367_v25 }
 0x263   : > { %v373_v27 = vmul.f32 1.442695, %v370_v26 }
 0x265   : > { %708 = vpow2.f32 %v373_v27 }
 0x266   : > { %710 = vpow2.f32 %v353_v30 }
 0x267   : > { %712 = vpow2.f32 %v355_v31 }
 0x26b   : > { %v707_v28 = vpop.eup %706 }
 0x26c   : > { %375 = vadd.xlane.f32.xlu0 %v707_v28 }
 0x26f   : > { %v709_v29 = vpop.eup %708 }
 0x270   : > { %377 = vadd.xlane.f32.xlu1 %v709_v29  ;;  %v711_v32 = vpop.eup %710 }
 0x271   : > { %v357_v34 = vmul.f32 %v711_v32, %v349_v33  ;;  %v713_v35 = vpop.eup %712 }
 0x272   : > { %v358_v39 = vmul.f32 %v713_v35, %v350_v37 }
 0x2f9   : > { %v376_v36 = vpop.xlane.xlu0 %375 }
 0x2fa   : > { %v379_v38 = vadd.f32 %v376_v36, %v357_v34 }
 0x2fc   : > { %382 = vst.msk [vmem:[#allocation3] sm:$0xff] %vm381_vm3, %v379_v38 }
 0x2fd   : > { %v378_v40 = vpop.xlane.xlu1 %377 }
 0x2fe   : > { %v380_v41 = vadd.f32 %v378_v40, %v358_v39 }
 0x300   : > { %383 = vst.msk [vmem:[#allocation3 + $0x8] sm:$0xff] %vm381_vm3, %v380_v41 }
 0x301 PF: > { %p560_p10 = scmp.ne.s32.totalorder %s891_s19, 1 }
 0x302   : > { %v915_v43 = vmov (!%p560_p10), 0   ;;  %v390_v46 = vld [vmem:[#allocation2] sm:$0xff] (!%p560_p10)  ;;  %v391_v49 = vld [vmem:[#allocation2 + $0x8] sm:$0xff] (!%p560_p10) }
 0x303   : > { %389 = sbr.rel (%p560_p10) target bundleno = 922 (0x39a), region = 52  ;;  %v392_v42 = vld [vmem:[#allocation3] sm:$0xff] (!%p560_p10)  ;;  %714 = vset.pattern.permute.xlu0 (!%p560_p10), %v915_v43 }
 0x304   : > { %715 = vlog2.f32 (!%p560_p10), %v392_v42 }
 0x307   : > { %v393_v44 = vld [vmem:[#allocation3 + $0x8] sm:$0xff] (!%p560_p10) }
 0x308   : > { %717 = vlog2.f32 (!%p560_p10), %v393_v44 }
 0x30e   : > { %v716_v45 = vpop.eup %715 }
 0x30f   : > { %v395_v48 = vmul.f32 0.6931472, %v716_v45 }
 0x311   : > { %v398_v51 = vadd.f32 %v395_v48, %v390_v46 }
 0x312   : > { %v718_v47 = vpop.eup %717 }
 0x313   : > { %v397_v50 = vmul.f32 0.6931472, %v718_v47  ;;  %402 = vperm.xlu0 %714, %v398_v51  }
 0x315   : > { %v399_v52 = vadd.f32 %v397_v50, %v391_v49 }
 0x317   : > { %407 = vperm.xlu0 %714, %v399_v52  }
 0x392   : > { %v403_v53 = vpop.permute.xlu0 %402 }
 0x393   : > { %v410_v54 = vsub.f32 %v1155_v6, %v403_v53 }
 0x395   : > { %412 = vst [vmem:[%s1159_s25] sm:$0xff] %v410_v54 }
 0x396   : > { %v408_v55 = vpop.permute.xlu0 %407 }
 0x397   : > { %v411_v56 = vsub.f32 %v1157_v9, %v408_v55 }
 0x399   : > { %413 = vst [vmem:[%s1159_s25 + $0x8] sm:$0xff] %v411_v56 }
 0x39a PF: > { %s422_s4 = smul.u32 %s887_s18, %s891_s19  ;;  %s431_s21 = sshll.u32 %s1159_s25, 4  ;;  %s1178_s21 = int_to_ptr.vmem [resolvable:$true] %s431_s21 }
 0x39b   : > { %s1187_s10 = scalar_lea.sflag [#allocation6], %s242_s20  ;;  %s777_s15 = scalar_lea.vmem %s1178_s21, 256 }
 0x39c   : > { %s562_s0 = sshll.u32 %s422_s4, 7  ;;  %p778_p0 = scmp.ne.s32.totalorder %s1178_s21, %s777_s15 }
 0x39d   : > { %s1183_s28 = scalar_lea.hbm %s1251_s3, %s562_s0  ;;  %p1284_p8 = scmp.ne.s32.totalorder %s1269_s30, 0 }
 0x39e   : > { %s916_s18 = smov [#allocation9]  }
 0x39f   : > { %p779_p11 = pnand %p778_p0, %p1284_p8  ;;  %s781_s19 = sshll.u32 %s916_s18, 4  ;;  %s782_s19 = int_to_ptr.vmem [resolvable:$false] %s781_s19 }
 0x3a0   : > { %s783_s5 = scalar_lea.vmem %s782_s19, 512  ;;  %p784_p1 = scmp.lt.s32.totalorder %s1178_s21, %s782_s19 }
 0x3a1   : > { %p780_p13 = pneg %p779_p11  ;;  %p785_p7 = scmp.lt.s32.totalorder %s783_s5, %s777_s15 }
 0x3a3   : > { %p786_p9 = por %p785_p7, %p784_p1 }
 0x3a5   : > { %p787_p5 = pnand %p786_p9, %p780_p13 }
 0x3a7   : > { %790 = shalt.err (!%p787_p5)
}
 0x3a8   : > { %s791_s20 = scalar_lea.hbm %s1183_s28, 256  ;;  %s795_s7 = scalar_lea.hbm %s1251_s3, 768 }
 0x3a9   : > { %p792_p12 = scmp.ne.s32.totalorder %s1183_s28, %s791_s20  ;;  %p796_p3 = scmp.lt.u32.totalorder %s1183_s28, %s1251_s3 }
 0x3aa   : > { %p797_p6 = scmp.lt.u32.totalorder %s795_s7, %s791_s20  ;;  %p799_p0 = scmp.lt.u32.totalorder %s791_s20, %s1183_s28 }
 0x3ab   : > { %p793_p4 = pnand %p792_p12, %p1284_p8 }
 0x3ac   : > { %p798_p10 = por %p797_p6, %p796_p3 }
 0x3ad   : > { %p794_p2 = pneg %p793_p4 }
 0x3ae   : > { %p800_p11 = por %p799_p0, %p798_p10 }
 0x3b0   : > { %p801_p13 = pnand %p800_p11, %p794_p2 }
 0x3b2   : > { %804 = shalt.err (!%p801_p13)
}
 0x3b3   : > { %s917_s4 = smov 128   ;;  %s918_s0 = smov 384  }
 0x3b4   : > { %s919_s6 = smov 8  }
 0x3b5   : > { %582 = dma.vmem_to_hbm [thread:$0]  (%p1284_p8), %s1178_s21, 256, %s1183_s28, %s1187_s10, %s917_s4, %s918_s0, %s919_s6  }
 0x3b6 PF: > { %s1285_s9 = sld [smem:[#allocation15_spill]]  ;;  %p599_p1 = scmp.ge.s32.totalorder %s903_s22, 2 }
 0x3b7   : > { %s446_s15 = sand.u32 1, %s863_s12  }
 0x3b8   : > { %s447_s18 = scalar_lea.sflag [#allocation6], %s446_s15 }
 0x3bc   : > { %p1286_p7 = scmp.ne.s32.totalorder %s1285_s9, 0 }
 0x3be   : > { %p593_p9 = pnand %p599_p1, %p1286_p7 }
 0x3c0   : > { %858 = dma.done.wait (!%p593_p9), %s447_s18, 256  }
 0x3c1   : > { %860 = vsyncadd (!%p593_p9), %s447_s18, 4294967040  ;;  %s20_s22 = sadd.s32 1, %s903_s22   ;;  %s1287_s18 = sld [smem:[#allocation13_spill]] }
 0x3c2   : > { %p17_p5 = scmp.ge.s32.totalorder %s20_s22, 8   ;;  %s1288_s19 = sld [smem:[#allocation14_spill]] }
 0x3c3   : > { %s1289_s12 = smov %s867_s13  ;;  %s1290_s13 = smov %s871_s14 }
 0x3c4   : > { %s1291_s14 = smov %s1132_s11  ;;  %s1292_s15 = smov %s879_s16 }
 0x3c5   : > { %s1293_s16 = smov %s883_s17  ;;  %s1294_s17 = smov %s1088_s27 }
 0x3c6   : > { %s1295_s20 = smov %s1298_s23  ;;  %s1296_s21 = smov %s1302_s24 }
 0x3c7   :  { %19 = sbr.rel (!%p17_p5) target bundleno = 12 (0xc), region = 98 }
 0x3ce   :  { %452 = vsyncpa [#allocation5], 1 }
 0x3cf   :  { %454 = vsyncpa [#allocation5 + $0x1], 1 }
 0x3d0   :  { %455 = vsyncpa [#allocation8], 1 }
 0x3d1   :  { %457 = vsyncpa [#allocation8 + $0x1], 1 }
 0x3d2   :  { %458 = vsyncpa [#allocation6], 1 }
 0x3d3   :  { %460 = vsyncpa [#allocation6 + $0x1], 1 }

</bundles_post_ra>
